<compile_context>
chip_gen: v6e
topology: v6e:2x2x1
jax: 0.10.0
libtpu: 0.0.40
codegen_flags: <defaults>
</compile_context>

<pallas_src>
import functools

import jax
import jax.numpy as jnp
from jax.experimental import pallas as pl
from jax.experimental.pallas import tpu as pltpu


# Working set per kernel is < ~5 MiB; 48 MiB keeps headroom on 128 MiB parts
# while staying safely under v7x's 64 MiB physical VMEM.
_VMEM_LIMIT = 48 * 1024 * 1024
_BN_EPS = 1e-5


def _rup(x, m):
    return (x + m - 1) // m * m


def _cdiv(a, b):
    return -(-a // b)


def _row_tile(m, cap=512):
    """Row (sublane) tile.

    Picks a tile that (a) is a multiple of 16 sublanes, (b) is capped at
    `cap` rows, and (c) yields >= 2 row blocks whenever M allows it so both
    v7x TensorCores get work on the small-M late-stage layers, while keeping
    row padding minimal.
    """
    nb = max(2, _cdiv(m, cap))
    tm = max(16, min(cap, _rup(_cdiv(m, nb), 16)))
    return tm, _rup(m, tm)


# ----------------------------- Pallas kernels ------------------------------

def _mm_kernel(*refs, has_in, relu_in, has_out, relu_out):
    """out = epilogue(prologue(A) @ W), full-K in one step (bf16 MXU, f32 acc).

    prologue: optional per-K-column affine (+ReLU)  -> fused pre-conv BN.
    epilogue: optional per-N-column affine (+ReLU)  -> fused post-conv BN.
    """
    refs = list(refs)
    a_ref = refs.pop(0)
    if has_in:
        si_ref = refs.pop(0)
        bi_ref = refs.pop(0)
    w_ref = refs.pop(0)
    if has_out:
        so_ref = refs.pop(0)
        bo_ref = refs.pop(0)
    (o_ref,) = refs

    a = a_ref[...]
    if has_in:
        a = a.astype(jnp.float32) * si_ref[...] + bi_ref[...]
        if relu_in:
            a = jnp.maximum(a, 0.0)
        a = a.astype(jnp.bfloat16)
    y = jnp.dot(a, w_ref[...], preferred_element_type=jnp.float32)
    if has_out:
        y = y * so_ref[...] + bo_ref[...]
        if relu_out:
            y = jnp.maximum(y, 0.0)
    o_ref[...] = y.astype(o_ref.dtype)


def pallas_matmul(a, w, *, scale_in=None, bias_in=None, relu_in=False,
                  scale_out=None, bias_out=None, relu_out=False,
                  out_dtype=jnp.bfloat16):
    """(M,K) @ (K,N) on the MXU, fused affines, weight VMEM-resident."""
    M, K = a.shape
    Kw, N = w.shape
    assert K == Kw
    Kp = _rup(K, 128)
    tm, Mp = _row_tile(M, 512)
    tn = min(512, _rup(N, 128))
    Np = _rup(N, tn)

    a_p = a.astype(jnp.bfloat16)
    if (Mp, Kp) != (M, K):
        a_p = jnp.pad(a_p, ((0, Mp - M), (0, Kp - K)))
    w_p = w.astype(jnp.bfloat16)
    if (Kp, Np) != (K, N):
        w_p = jnp.pad(w_p, ((0, Kp - K), (0, Np - N)))

    has_in = scale_in is not None
    has_out = scale_out is not None

    operands = [a_p]
    in_specs = [pl.BlockSpec((tm, Kp), lambda i, j: (i, 0))]
    if has_in:
        si = jnp.pad(scale_in.astype(jnp.float32).reshape(1, K),
                     ((0, 0), (0, Kp - K)))
        bi = jnp.pad(bias_in.astype(jnp.float32).reshape(1, K),
                     ((0, 0), (0, Kp - K)))
        operands += [si, bi]
        in_specs += [pl.BlockSpec((1, Kp), lambda i, j: (0, 0)),
                     pl.BlockSpec((1, Kp), lambda i, j: (0, 0))]
    operands.append(w_p)
    # Full-K weight block with a constant index along the row-tile axis:
    # DMA'd once, stays resident in VMEM for all row tiles.
    in_specs.append(pl.BlockSpec((Kp, tn), lambda i, j: (0, j)))
    if has_out:
        so = jnp.pad(scale_out.astype(jnp.float32).reshape(1, N),
                     ((0, 0), (0, Np - N)))
        bo = jnp.pad(bias_out.astype(jnp.float32).reshape(1, N),
                     ((0, 0), (0, Np - N)))
        operands += [so, bo]
        in_specs += [pl.BlockSpec((1, tn), lambda i, j: (0, j)),
                     pl.BlockSpec((1, tn), lambda i, j: (0, j))]

    kernel = functools.partial(_mm_kernel, has_in=has_in, relu_in=relu_in,
                               has_out=has_out, relu_out=relu_out)
    out = pl.pallas_call(
        kernel,
        out_shape=jax.ShapeDtypeStruct((Mp, Np), out_dtype),
        grid_spec=pltpu.PrefetchScalarGridSpec(
            num_scalar_prefetch=0,
            grid=(Mp // tm, Np // tn),
            in_specs=in_specs,
            out_specs=pl.BlockSpec((tm, tn), lambda i, j: (i, j))),
        compiler_params=pltpu.CompilerParams(
            dimension_semantics=("parallel", "parallel"),
            vmem_limit_bytes=_VMEM_LIMIT),
    )(*operands)
    if (Mp, Np) != (M, N):
        out = out[:M, :N]
    return out


def _dense_layer_kernel(x_ref, s1_ref, b1_ref, w1_ref, s2_ref, b2_ref,
                        w2_ref, o_ref):
    """Fused DenseNet layer matmuls: relu(bn2(relu(bn1(x)) @ W1)) @ W2_taps."""
    a = x_ref[...].astype(jnp.float32) * s1_ref[...] + b1_ref[...]
    a = jnp.maximum(a, 0.0).astype(jnp.bfloat16)
    b = jnp.dot(a, w1_ref[...], preferred_element_type=jnp.float32)
    b = jnp.maximum(b * s2_ref[...] + b2_ref[...], 0.0).astype(jnp.bfloat16)
    z = jnp.dot(b, w2_ref[...], preferred_element_type=jnp.float32)
    o_ref[...] = z.astype(o_ref.dtype)


def fused_dense_layer_matmuls(x2d, w1, s1, b1, s2, b2, w2):
    """Single Pallas kernel for a dense layer's two matmuls.

    x2d: (M, C) features, w1: (C, 128) bottleneck 1x1, w2: (128, 9*growth)
    per-tap layout of the 3x3 conv.  Returns z (M, 9*growth); the spatial
    tap shift-sum is done by the caller.
    """
    M, K = x2d.shape
    Kw, Nb = w1.shape
    K2, N2 = w2.shape
    assert K == Kw and Nb == K2
    Kp = _rup(K, 128)
    N2p = _rup(N2, 128)
    tm, Mp = _row_tile(M, 512)

    x_p = x2d.astype(jnp.bfloat16)
    if (Mp, Kp) != (M, K):
        x_p = jnp.pad(x_p, ((0, Mp - M), (0, Kp - K)))
    w1_p = w1.astype(jnp.bfloat16)
    if Kp != K:
        w1_p = jnp.pad(w1_p, ((0, Kp - K), (0, 0)))
    w2_p = w2.astype(jnp.bfloat16)
    if N2p != N2:
        w2_p = jnp.pad(w2_p, ((0, 0), (0, N2p - N2)))
    s1p = jnp.pad(s1.astype(jnp.float32).reshape(1, K), ((0, 0), (0, Kp - K)))
    b1p = jnp.pad(b1.astype(jnp.float32).reshape(1, K), ((0, 0), (0, Kp - K)))
    s2p = s2.astype(jnp.float32).reshape(1, Nb)
    b2p = b2.astype(jnp.float32).reshape(1, Nb)

    out = pl.pallas_call(
        _dense_layer_kernel,
        out_shape=jax.ShapeDtypeStruct((Mp, N2p), jnp.bfloat16),
        grid_spec=pltpu.PrefetchScalarGridSpec(
            num_scalar_prefetch=0,
            grid=(Mp // tm,),
            in_specs=[
                pl.BlockSpec((tm, Kp), lambda i: (i, 0)),   # activations
                pl.BlockSpec((1, Kp), lambda i: (0, 0)),    # bn1 scale
                pl.BlockSpec((1, Kp), lambda i: (0, 0)),    # bn1 bias
                pl.BlockSpec((Kp, Nb), lambda i: (0, 0)),   # W1 (resident)
                pl.BlockSpec((1, Nb), lambda i: (0, 0)),    # bn2 scale
                pl.BlockSpec((1, Nb), lambda i: (0, 0)),    # bn2 bias
                pl.BlockSpec((Nb, N2p), lambda i: (0, 0)),  # W2 taps (resident)
            ],
            out_specs=pl.BlockSpec((tm, N2p), lambda i: (i, 0))),
        compiler_params=pltpu.CompilerParams(
            dimension_semantics=("parallel",),
            vmem_limit_bytes=_VMEM_LIMIT),
    )(x_p, s1p, b1p, w1_p, s2p, b2p, w2_p)
    if (Mp, N2p) != (M, N2):
        out = out[:M, :N2]
    return out


def _pool_kernel(*refs, op, nwin):
    o_ref = refs[-1]
    acc = refs[0][...].astype(jnp.float32)
    for r in refs[1:-1]:
        v = r[...].astype(jnp.float32)
        acc = jnp.maximum(acc, v) if op == "max" else acc + v
    if op == "mean":
        acc = acc * (1.0 / nwin)
    o_ref[...] = acc.astype(o_ref.dtype)


def _pool_reduce(views, op, out_dtype=jnp.bfloat16):
    """views: list of P (M, C) tap slices -> (M, C) window reduction."""
    P = len(views)
    M, C = views[0].shape
    Cp = _rup(C, 128)
    tm, Mp = _row_tile(M, 1024)
    padded = []
    for v in views:
        if (Mp, Cp) != (M, C):
            v = jnp.pad(v, ((0, Mp - M), (0, Cp - C)))
        padded.append(v)
    out = pl.pallas_call(
        functools.partial(_pool_kernel, op=op, nwin=P),
        out_shape=jax.ShapeDtypeStruct((Mp, Cp), out_dtype),
        grid_spec=pltpu.PrefetchScalarGridSpec(
            num_scalar_prefetch=0,
            grid=(Mp // tm,),
            in_specs=[pl.BlockSpec((tm, Cp), lambda i: (i, 0))
                      for _ in range(P)],
            out_specs=pl.BlockSpec((tm, Cp), lambda i: (i, 0))),
        compiler_params=pltpu.CompilerParams(
            dimension_semantics=("parallel",),
            vmem_limit_bytes=_VMEM_LIMIT),
    )(*padded)
    if (Mp, Cp) != (M, C):
        out = out[:M, :C]
    return out


# ------------------------------- glue (JAX) --------------------------------

def _extract_window_views(x_nhwc, kh, kw, stride, pad, pad_value=0.0):
    N, H, W, C = x_nhwc.shape
    if pad > 0:
        x_nhwc = jnp.pad(x_nhwc, ((0, 0), (pad, pad), (pad, pad), (0, 0)),
                         constant_values=pad_value)
    Hp, Wp = H + 2 * pad, W + 2 * pad
    Ho = (Hp - kh) // stride + 1
    Wo = (Wp - kw) // stride + 1
    views = []
    for ky in range(kh):
        for kx in range(kw):
            views.append(x_nhwc[:, ky::stride, kx::stride, :][:, :Ho, :Wo, :])
    return views, Ho, Wo  # list of (N, Ho, Wo, C)


def conv2d_im2col(x_nhwc, w_mat, kh, kw, stride=1, pad=0,
                  scale_in=None, bias_in=None, relu_in=False,
                  scale_out=None, bias_out=None, relu_out=False):
    """PyTorch-style conv (no bias) via im2col + MXU matmul (used for conv0)."""
    N = x_nhwc.shape[0]
    views, Ho, Wo = _extract_window_views(x_nhwc, kh, kw, stride, pad)
    # (N, Ho, Wo, kh*kw*Cin): tap-major then channel (matches weight layout).
    patches = jnp.concatenate(views, axis=-1).reshape(N * Ho * Wo, -1)
    y = pallas_matmul(patches, w_mat,
                      scale_in=scale_in, bias_in=bias_in, relu_in=relu_in,
                      scale_out=scale_out, bias_out=bias_out,
                      relu_out=relu_out)
    return y.reshape(N, Ho, Wo, w_mat.shape[1])


def _conv3x3_tap_sum(z, N, H, W):
    """z: (M, 9*G) per-tap 1x1 outputs (tap-major) -> (N, H, W, G) 3x3 conv.

    Spatially shifts each tap's contribution by its kernel offset (zero
    border == padding=1) and sums the 9 contributions.
    """
    G = z.shape[1] // 9
    z4 = z.reshape(N, H, W, 9 * G)
    zp = jnp.pad(z4, ((0, 0), (1, 1), (1, 1), (0, 0)))
    acc = None
    for t in range(9):
        ky, kx = t // 3, t % 3
        c = zp[:, ky:ky + H, kx:kx + W, t * G:(t + 1) * G].astype(jnp.float32)
        acc = c if acc is None else acc + c
    return acc.astype(jnp.bfloat16)
    # TODO(synk): fold the 9-tap shift-sum into the matmul grid (halo DMA)
    #             instead of XLA-side pad + fused slice adds.


def maxpool_3x3_s2_p1(x_nhwc):
    N, H, W, C = x_nhwc.shape
    views, Ho, Wo = _extract_window_views(x_nhwc, 3, 3, 2, 1,
                                          pad_value=-jnp.inf)
    out = _pool_reduce([v.reshape(N * Ho * Wo, C) for v in views], "max")
    return out.reshape(N, Ho, Wo, C)


def avgpool_2x2_s2(x_nhwc):
    N, H, W, C = x_nhwc.shape
    views, Ho, Wo = _extract_window_views(x_nhwc, 2, 2, 2, 0)
    out = _pool_reduce([v.reshape(N * Ho * Wo, C) for v in views], "mean")
    return out.reshape(N, Ho, Wo, C)


def _bn_affine(p):
    scale = p["gamma"] / jnp.sqrt(p["var"] + _BN_EPS)
    bias = p["beta"] - p["mean"] * scale
    return scale, bias


def dense_layer(x, p):
    N, H, W, C = x.shape
    s1, b1 = _bn_affine(p["norm1"])
    s2, b2 = _bn_affine(p["norm2"])
    # One fused kernel: norm1+relu1 -> conv1(1x1) -> norm2+relu2 -> per-tap
    # 3x3 conv as a (M,128)@(128,288) matmul (fills the wide MXU).
    z = fused_dense_layer_matmuls(x.reshape(N * H * W, C), p["conv1_w"],
                                  s1, b1, s2, b2, p["conv2_w"])
    y = _conv3x3_tap_sum(z, N, H, W)
    # TODO(synk): replace the per-layer concat with an aliased preallocated
    #             growth buffer (input_output_aliases) to kill O(L^2) copies.
    return jnp.concatenate([x, y], axis=-1)


def dense_block(x, layers):
    for p in layers:
        x = dense_layer(x, p)
    return x


def transition(x, p):
    N, H, W, C = x.shape
    s, b = _bn_affine(p["norm"])
    y = pallas_matmul(x.reshape(N * H * W, C), p["conv_w"],
                      scale_in=s, bias_in=b, relu_in=True)
    y = y.reshape(N, H, W, -1)
    return avgpool_2x2_s2(y)


def encoder_forward(img_nchw, params):
    # NCHW -> NHWC with the channel mean pre-subtracted (fuses into the
    # transpose); 1/std is folded into conv0's per-K-column prologue, which
    # keeps the zero-padded conv0 border numerically exact.
    x = (jnp.transpose(img_nchw, (0, 2, 3, 1)).astype(jnp.float32)
         - params["mean"]).astype(jnp.bfloat16)
    inv_std = (1.0 / params["std"]).astype(jnp.float32)
    s0, b0 = _bn_affine(params["norm0"])
    x = conv2d_im2col(x, params["conv0_w"], 7, 7, stride=2, pad=3,
                      scale_in=jnp.tile(inv_std, 49),
                      bias_in=jnp.zeros((147,), jnp.float32), relu_in=False,
                      scale_out=s0, bias_out=b0, relu_out=True)
    x = maxpool_3x3_s2_p1(x)
    x = dense_block(x, params["denseblock1"])
    s4 = x
    x = transition(x, params["transition1"])
    x = dense_block(x, params["denseblock2"])
    s8 = x
    x = transition(x, params["transition2"])
    x = dense_block(x, params["denseblock3"])
    s16 = x
    to_nchw = lambda t: jnp.transpose(t, (0, 3, 1, 2)).astype(jnp.float32)
    return {"s4": to_nchw(s4), "s8": to_nchw(s8), "s16": to_nchw(s16)}


# ----------------------------- parameter init ------------------------------

def make_params(seed=0):
    keys = iter(jax.random.split(jax.random.PRNGKey(seed), 1024))
    nk = lambda: next(keys)

    def conv_w(cout, cin, kh, kw, taps_in_cols=False):
        std = (2.0 / (cin * kh * kw)) ** 0.5
        w = std * jax.random.normal(nk(), (cout, cin, kh, kw), jnp.float32)
        if taps_in_cols:
            # (Cin, kh*kw*Cout): 3x3 convs run as per-tap 1x1 convs whose
            # spatially shifted outputs are summed afterwards.
            return jnp.transpose(w, (1, 2, 3, 0)).reshape(
                cin, kh * kw * cout).astype(jnp.bfloat16)
        # (kh*kw*Cin, Cout), tap-major then channel (matches im2col patches).
        return jnp.transpose(w, (2, 3, 1, 0)).reshape(
            kh * kw * cin, cout).astype(jnp.bfloat16)

    def bn_p(c):
        return {
            "gamma": 1.0 + 0.1 * jax.random.normal(nk(), (c,), jnp.float32),
            "beta": 0.05 * jax.random.normal(nk(), (c,), jnp.float32),
            "mean": 0.05 * jax.random.normal(nk(), (c,), jnp.float32),
            "var": jax.random.uniform(nk(), (c,), jnp.float32, 0.5, 1.5),
        }

    def block_p(cin, nlayers, growth=32, bn_size=4):
        layers, c = [], cin
        for _ in range(nlayers):
            layers.append({
                "norm1": bn_p(c),
                "conv1_w": conv_w(bn_size * growth, c, 1, 1),
                "norm2": bn_p(bn_size * growth),
                "conv2_w": conv_w(growth, bn_size * growth, 3, 3,
                                  taps_in_cols=True),
            })
            c += growth
        return layers, c

    p = {
        "mean": jnp.array([0.485, 0.456, 0.406], jnp.float32),
        "std": jnp.array([0.229, 0.224, 0.225], jnp.float32),
        "conv0_w": conv_w(64, 3, 7, 7),
        "norm0": bn_p(64),
    }
    p["denseblock1"], c = block_p(64, 6)                         # -> 256
    p["transition1"] = {"norm": bn_p(c), "conv_w": conv_w(c // 2, c, 1, 1)}
    c //= 2                                                       # 128
    p["denseblock2"], c = block_p(c, 12)                          # -> 512
    p["transition2"] = {"norm": bn_p(c), "conv_w": conv_w(c // 2, c, 1, 1)}
    c //= 2                                                       # 256
    p["denseblock3"], c = block_p(c, 24)                          # -> 1024
    return p


if __name__ == "__main__":
    params = make_params(0)
    img = jax.random.uniform(jax.random.PRNGKey(0), (2, 3, 32, 32),
                             jnp.float32)

    out = encoder_forward(img, params)
    out = jax.block_until_ready(out)

    assert out["s4"].shape == (2, 256, 8, 8), out["s4"].shape
    assert out["s8"].shape == (2, 512, 4, 4), out["s8"].shape
    assert out["s16"].shape == (2, 1024, 2, 2), out["s16"].shape
    assert all(bool(jnp.all(jnp.isfinite(v))) for v in out.values())
    print("KERNEL_OK")
</pallas_src>

<mosaic_0001>
module attributes {stable_mosaic.version = 11 : i64} {
  func.func @_mm_kernel(%arg0: i32, %arg1: i32, %arg2: memref<256x256xbf16, #tpu.memory_space<vmem>>, %arg3: memref<1x256xf32, #tpu.memory_space<vmem>>, %arg4: memref<1x256xf32, #tpu.memory_space<vmem>>, %arg5: memref<256x128xbf16, #tpu.memory_space<vmem>>, %arg6: memref<1x128xf32, #tpu.memory_space<vmem>>, %arg7: memref<1x128xf32, #tpu.memory_space<vmem>>, %arg8: memref<256x128xbf16, #tpu.memory_space<vmem>>) attributes {dimension_semantics = [#tpu.dimension_semantics<parallel>, #tpu.dimension_semantics<parallel>], iteration_bounds = array<i64: 2, 1>, scalar_prefetch = 0 : i64, scratch_operands = 0 : i64, tpu.core_type = #tpu.core_type<tc>, window_params = [{transform_indices = @transform_0, window_bounds = array<i64: 256, 256>}, {pipeline_mode = #tpu.pipeline_mode<synchronous>, transform_indices = @transform_1, window_bounds = array<i64: 1, 256>}, {pipeline_mode = #tpu.pipeline_mode<synchronous>, transform_indices = @transform_2, window_bounds = array<i64: 1, 256>}, {transform_indices = @transform_3, window_bounds = array<i64: 256, 128>}, {transform_indices = @transform_4, window_bounds = array<i64: 1, 128>}, {transform_indices = @transform_5, window_bounds = array<i64: 1, 128>}, {transform_indices = @transform_6, window_bounds = array<i64: 256, 128>}]} {
    %c0 = arith.constant 0 : index
    %c0_0 = arith.constant 0 : index
    %0 = vector.load %arg2[%c0, %c0_0] : memref<256x256xbf16, #tpu.memory_space<vmem>>, vector<256x256xbf16>
    %1 = arith.extf %0 : vector<256x256xbf16> to vector<256x256xf32>
    %c0_1 = arith.constant 0 : index
    %c0_2 = arith.constant 0 : index
    %2 = vector.load %arg3[%c0_1, %c0_2] : memref<1x256xf32, #tpu.memory_space<vmem>>, vector<1x256xf32>
    %3 = vector.broadcast %2 : vector<1x256xf32> to vector<256x256xf32>
    %4 = arith.mulf %1, %3 : vector<256x256xf32>
    %c0_3 = arith.constant 0 : index
    %c0_4 = arith.constant 0 : index
    %5 = vector.load %arg4[%c0_3, %c0_4] : memref<1x256xf32, #tpu.memory_space<vmem>>, vector<1x256xf32>
    %6 = vector.broadcast %5 : vector<1x256xf32> to vector<256x256xf32>
    %7 = arith.addf %4, %6 : vector<256x256xf32>
    %8 = arith.truncf %7 : vector<256x256xf32> to vector<256x256xbf16>
    %c0_5 = arith.constant 0 : index
    %c0_6 = arith.constant 0 : index
    %9 = vector.load %arg5[%c0_5, %c0_6] : memref<256x128xbf16, #tpu.memory_space<vmem>>, vector<256x128xbf16>
    %cst = arith.constant dense<0.000000e+00> : vector<256x128xf32>
    %10 = tpu.matmul %8, %9, %cst {dimension_numbers = #tpu.dot_dimension_numbers<[1], [0], [0], [1], [0, 0, 1, 1], [], []>} : vector<256x256xbf16>, vector<256x128xbf16>, vector<256x128xf32> -> vector<256x128xf32>
    %c0_7 = arith.constant 0 : index
    %c0_8 = arith.constant 0 : index
    %11 = vector.load %arg6[%c0_7, %c0_8] : memref<1x128xf32, #tpu.memory_space<vmem>>, vector<1x128xf32>
    %12 = vector.broadcast %11 : vector<1x128xf32> to vector<256x128xf32>
    %13 = arith.mulf %10, %12 : vector<256x128xf32>
    %c0_9 = arith.constant 0 : index
    %c0_10 = arith.constant 0 : index
    %14 = vector.load %arg7[%c0_9, %c0_10] : memref<1x128xf32, #tpu.memory_space<vmem>>, vector<1x128xf32>
    %15 = vector.broadcast %14 : vector<1x128xf32> to vector<256x128xf32>
    %16 = arith.addf %13, %15 : vector<256x128xf32>
    %cst_11 = arith.constant 0.000000e+00 : f32
    %17 = vector.broadcast %cst_11 : f32 to vector<256x128xf32>
    %18 = arith.maximumf %16, %17 : vector<256x128xf32>
    %19 = arith.truncf %18 : vector<256x128xf32> to vector<256x128xbf16>
    %c0_12 = arith.constant 0 : index
    %c0_13 = arith.constant 0 : index
    %20 = vector.load %arg8[%c0_12, %c0_13] : memref<256x128xbf16, #tpu.memory_space<vmem>>, vector<256x128xbf16>
    tpu.vector_store %arg8[%c0_12, %c0_13], %19 {strides = array<i32>} : memref<256x128xbf16, #tpu.memory_space<vmem>>, vector<256x128xbf16>,
    return
  }
  func.func @transform_0(%arg0: i32, %arg1: i32) -> (i32, i32) {
    %c0_i32 = arith.constant 0 : i32
    %c0_i32_0 = arith.constant 0 : i32
    return %arg0, %c0_i32 : i32, i32
  }
  func.func @transform_1(%arg0: i32, %arg1: i32) -> (i32, i32) {
    %c0_i32 = arith.constant 0 : i32
    %c0_i32_0 = arith.constant 0 : i32
    %c0_i32_1 = arith.constant 0 : i32
    return %c0_i32, %c0_i32_0 : i32, i32
  }
  func.func @transform_2(%arg0: i32, %arg1: i32) -> (i32, i32) {
    %c0_i32 = arith.constant 0 : i32
    %c0_i32_0 = arith.constant 0 : i32
    %c0_i32_1 = arith.constant 0 : i32
    return %c0_i32, %c0_i32_0 : i32, i32
  }
  func.func @transform_3(%arg0: i32, %arg1: i32) -> (i32, i32) {
    %c0_i32 = arith.constant 0 : i32
    %c0_i32_0 = arith.constant 0 : i32
    return %c0_i32, %arg1 : i32, i32
  }
  func.func @transform_4(%arg0: i32, %arg1: i32) -> (i32, i32) {
    %c0_i32 = arith.constant 0 : i32
    %c0_i32_0 = arith.constant 0 : i32
    return %c0_i32, %arg1 : i32, i32
  }
  func.func @transform_5(%arg0: i32, %arg1: i32) -> (i32, i32) {
    %c0_i32 = arith.constant 0 : i32
    %c0_i32_0 = arith.constant 0 : i32
    return %c0_i32, %arg1 : i32, i32
  }
  func.func @transform_6(%arg0: i32, %arg1: i32) -> (i32, i32) {
    %c0_i32 = arith.constant 0 : i32
    return %arg0, %arg1 : i32, i32
  }
}

</mosaic_0001>

<bundles_post_ra>
// kernel: tpu_custom_call.1
= control target key start
LH: loop header
LB: loop body
LE: loop exit
PB: predicated region body
PF: predicated region fallthrough
CT: control target
= control target key end

     0   :  { %s2439_s0 = inlined_call_operand.hbm [shape: bf16[512,256], index: 0, kind: input, shape index: {}]   ;;  %s2440_s1 = inlined_call_operand.hbm [shape: f32[1,256], index: 1, kind: input, shape index: {}]   ;;  %s2441_s2 = inlined_call_operand.vmem [shape: f32[1,256], index: 2, kind: input, shape index: {}]   ;;  %s2442_s3 = inlined_call_operand.hbm [shape: bf16[256,128], index: 3, kind: input, shape index: {}]   ;;  %s2443_s4 = inlined_call_operand.vmem [shape: f32[1,128], index: 4, kind: input, shape index: {}]   ;;  %s2444_s5 = inlined_call_operand.vmem [shape: f32[1,128], index: 5, kind: input, shape index: {}]   ;;  %s2445_s6 = inlined_call_operand.hbm [shape: bf16[512,128], index: 6, kind: output, shape index: {}]  }
   0x1   :  { %2456 = sst [smem:[#allocation15_spill]] %s2440_s1 }
   0x2   :  { %11 = vsyncpa [#allocation3], 0 }
   0x3   :  { %13 = vsyncpa [#allocation3 + $0x1], 0 }
   0x4   :  { %14 = vsyncpa [#allocation6], 0 }
   0x5   :  { %15 = vsyncpa [#allocation4], 0 }
   0x6   :  { %17 = vsyncpa [#allocation4 + $0x1], 0  ;;  %s1978_s21 = smov 0   ;;  %s1980_s22 = smov 0  }
   0x7   :  { %s1982_s23 = smov 0   ;;  %s1984_s24 = smov 0  }
   0x8   :  { %s1986_s25 = smov 0   ;;  %s1988_s26 = smov 0  }
   0x9 LB: > { %2457 = sst [smem:[#allocation12_spill]] %s1911_s21  ;;  %s1332_s27 = sadd.s32 4294967295, %s1931_s26   ;;  %s1931_s26 = sphi %s1988_s26, %s23_s26   ;;  %s1927_s25 = sphi %s1986_s25, %s2485_s25   ;;  %s1923_s24 = sphi %s1984_s24, %s2484_s24   ;;  %s1919_s23 = sphi %s1982_s23, %s2483_s23   ;;  %s1915_s22 = sphi %s1980_s22, %s2482_s22   ;;  %s1911_s21 = sphi %s1978_s21, %s2481_s21  }
   0xa   : > { %2458 = sst [smem:[#allocation13_spill]] %s1931_s26  ;;  %s1333_s28 = sadd.s32 4294967294, %s1931_s26  }
   0xb   : > { %p49_p0 = scmp.ne.s32.totalorder %s1919_s23, %s1915_s22  ;;  %p50_p1 = scmp.eq.s32.totalorder %s1931_s26, 0 }
   0xc   : > { %p55_p2 = scmp.ne.s32.totalorder %s1915_s22, %s1911_s21  ;;  %p2016_p3 = scmp.eq.s32.totalorder %s1332_s27, 0 }
   0xd   : > { %p201_p4 = scmp.eq.s32.totalorder %s1332_s27, 1  ;;  %p2020_p5 = por %p50_p1, %p49_p0 }
   0xe   : > { %s2459_s30 = scalar_select %p2016_p3, 1, 0 }
   0xf   : > { %p207_p6 = scmp.eq.s32.totalorder %s1333_s28, 1  ;;  %p2026_p7 = por %p2016_p3, %p55_p2 }
  0x10   : > { %p2030_p8 = por %p201_p4, %p49_p0  ;;  %p1334_p10 = scmp.ge.s32.totalorder %s1931_s26, 1 }
  0x11   : > { %s2461_s8 = scalar_select %p2026_p7, 1, 0 }
  0x12   : > { %s2462_s9 = scalar_select %p2030_p8, 1, 0 }
  0x13   : > { %p2034_p9 = por %p207_p6, %p55_p2  ;;  %p214_p11 = scmp.lt.s32.totalorder %s1931_s26, 3 }
  0x14   : > { %s1933_s12 = smov [#allocation5]   ;;  %p1691_p1 = scmp.lt.s32.totalorder %s1931_s26, 2 }
  0x15   : > { %s2463_s10 = scalar_select %p2034_p9, 1, 0 }
  0x16   : > { %p2041_p13 = pnand %p1334_p10, %p214_p11  ;;  %s227_s13 = sshll.u32 %s1933_s12, 4  ;;  %s228_s13 = int_to_ptr.vmem [resolvable:$true] %s227_s13 }
  0x17   : > { %2464 = sst [smem:[#allocation14_spill]] %s2463_s10  ;;  %p2050_p4 = pnand %p1691_p1, %p2020_p5 }
  0x18   : > { %s2465_s11 = scalar_select %p2041_p13, 1, 0 }
  0x19   : > { %p1674_p0 = pneg %p2041_p13  ;;  %s1934_s15 = smov [#allocation7]  }
  0x1a   : > { %s2466_s14 = scalar_select %p2050_p4, 1, 0 }
  0x1b   : > { %s242_s16 = sshll.u32 %s1934_s15, 4  ;;  %p2056_p2 = pnand %p1674_p0, %p2016_p3  ;;  %s243_s16 = int_to_ptr.vmem [resolvable:$true] %s242_s16 }
  0x1c   : > { %s1778_s18 = scalar_lea.vmem %s228_s13, 32  ;;  %p1786_p1 = scmp.lt.s32.totalorder %s228_s13, %s228_s13 }
  0x1d   : > { %p1769_p6 = pneg %p2056_p2  ;;  %p1779_p10 = scmp.ne.s32.totalorder %s228_s13, %s1778_s18 }
  0x1e   : > { %p1787_p12 = scmp.lt.s32.totalorder %s1778_s18, %s1778_s18 }
  0x1f   : > { %p1781_p5 = pnand %p1779_p10, %p1769_p6 }
  0x20   : > { %p1788_p9 = por %p1787_p12, %p1786_p1 }
  0x21   : > { %p1782_p11 = pneg %p1781_p5 }
  0x23   : > { %p1789_p8 = pnand %p1788_p9, %p1782_p11 }
  0x25   : > { %1792 = shalt.err (!%p1789_p8)
}
  0x26   : > { %s2468_s1 = sld [smem:[#allocation15_spill]]  ;;  %s1804_s27 = scalar_lea.vmem %s243_s16, 2048 }
  0x27   : > { %p1805_p0 = scmp.ne.s32.totalorder %s243_s16, %s1804_s27  ;;  %p1812_p10 = scmp.lt.s32.totalorder %s243_s16, %s243_s16 }
  0x28   : > { %p1813_p5 = scmp.lt.s32.totalorder %s1804_s27, %s1804_s27 }
  0x29   : > { %p1807_p3 = pnand %p1805_p0, %p1769_p6 }
  0x2a   : > { %p1814_p13 = por %p1813_p5, %p1812_p10 }
  0x2b   : > { %p1808_p7 = pneg %p1807_p3 }
  0x2c   : > { %1677 = dma.hbm_to_vmem [thread:$0]  (!%p2056_p2), %s2468_s1, 32, %s228_s13, [#allocation6]  }
  0x2d   : > { %p1815_p4 = pnand %p1814_p13, %p1808_p7 }
  0x2f   : > { %1818 = shalt.err (!%p1815_p4)
}
  0x30   : > { %s1935_s28 = smov 64   ;;  %s1936_s7 = smov 4  }
  0x31   : > { %1680 = dma.hbm_to_vmem [thread:$0]  (!%p2056_p2), %s2442_s3, 2048, %s243_s16, [#allocation6], %s1935_s28, %s1935_s28, %s1936_s7  }
  0x32   : > { %s268_s15 = sand.u32 1, %s1919_s23   ;;  %s35_s18 = sadd.s32 1, %s1927_s25 }
  0x33   : > { %s1340_s19 = sshll.u32 %s268_s15, 8  ;;  %p37_p3 = scmp.ge.s32.totalorder %s35_s18, 2 }
  0x34   : > { %s1405_s20 = sshll.u32 %s1927_s25, 12  ;;  %s272_s27 = scalar_lea.vmem [#allocation2], %s1340_s19 }
  0x35   : > { %s280_s29 = sshll.u32 %s272_s27, 4  ;;  %s2487_s18 = smov (%p37_p3, %s35_s18), 0  ;;  %s281_s29 = int_to_ptr.vmem [resolvable:$true] %s280_s29 }
  0x36   : > { %s279_s10 = scalar_lea.hbm %s2439_s0, %s1405_s20  ;;  %s39_s17 = ssub.s32 %s1927_s25, %s2487_s18 }
  0x37   : > { %p2088_p7 = scmp.eq.s32.totalorder %s39_s17, 0  ;;  %s269_s16 = scalar_lea.sflag [#allocation3], %s268_s15 }
  0x38   : > { %p2470_p8 = scmp.ne.s32.totalorder %s2466_s14, 0  ;;  %s1832_s28 = scalar_lea.vmem %s281_s29, 4096 }
  0x39   : > { %p1833_p12 = scmp.ne.s32.totalorder %s281_s29, %s1832_s28  ;;  %s1937_s7 = smov [#allocation2]  }
  0x3a   : > { %p1821_p9 = pneg %p2470_p8  ;;  %s1837_s12 = sshll.u32 %s1937_s7, 4  ;;  %s1838_s12 = int_to_ptr.vmem [resolvable:$false] %s1837_s12 }
  0x3b   : > { %s1839_s13 = scalar_lea.vmem %s1838_s12, 8192  ;;  %p1840_p2 = scmp.lt.s32.totalorder %s281_s29, %s1838_s12 }
  0x3c   : > { %p1835_p13 = pnand %p1833_p12, %p1821_p9  ;;  %p1841_p6 = scmp.lt.s32.totalorder %s1839_s13, %s1832_s28 }
  0x3e   : > { %p1836_p4 = pneg %p1835_p13  ;;  %p1842_p11 = por %p1841_p6, %p1840_p2 }
  0x40   : > { %p1843_p1 = pnand %p1842_p11, %p1836_p4 }
  0x42   : > { %1846 = shalt.err (!%p1843_p1)
}
  0x43   : > { %s1938_s1 = smov 128   ;;  %s1939_s26 = smov 8  }
  0x44   : > { %1684 = dma.hbm_to_vmem [thread:$0]  (!%p2470_p8), %s279_s10, 4096, %s281_s29, %s269_s16, %s1938_s1, %s1938_s1, %s1939_s26  }
  0x45   : > { %s2471_s15 = sadd.s32 1, %s1919_s23  ;;  %p2472_p0 = scmp.ne.s32.totalorder %s2465_s11, 0 }
  0x46   : > { %s2101_s19 = scalar_select %p2088_p7, %s1919_s23, %s2471_s15  }
  0x47   : > { %292 = sbr.rel (%p2472_p0) target bundleno = 392 (0x188), region = 44  ;;  %s2106_s20 = sand.u32 (!%p2472_p0), 1, %s1915_s22  }
  0x48   : > { %s1345_s27 = sshll.u32 (!%p2472_p0), %s2106_s20, 8  ;;  %s295_s17 = scalar_lea.sflag (!%p2472_p0), [#allocation3], %s2106_s20 }
  0x49   : > { %s2110_s28 = scalar_lea.vmem (!%p2472_p0), [#allocation2], %s1345_s27  ;;  %p2473_p10 = scmp.ne.s32.totalorder (!%p2472_p0), %s2461_s8, 0 }
  0x4c   : > { %1898 = dma.done.wait (%p2473_p10), %s295_s17, 4096  }
  0x4d   : > { %1900 = vsyncadd (%p2473_p10), %s295_s17, 4294963200  ;;  %p2474_p5 = scmp.ne.s32.totalorder %s2459_s30, 0 }
  0x4f   : > { %1902 = dma.done.wait (%p2474_p5), [#allocation6], 2080  }
  0x50   : > { %1904 = vsyncadd (%p2474_p5), [#allocation6], 4294965216  ;;  %v1751_v0 = vld [vmem:[#allocation7 + $0x78] sm:$0xff]   ;;  %v1753_v2 = vld [vmem:[#allocation7 + $0x70] sm:$0xff]   ;;  %v448_v5 = vlaneseq  ;;  %s1348_s14 = sshll.u32 %s2106_s20, 7  ;;  %s1438_s7 = sshll.u32 %s1923_s24, 11 }
  0x51   : > { %v1752_v1 = vld [vmem:[#allocation7 + $0x38] sm:$0xff]   ;;  %1534 = vmatprep.subr.bf16.mxu0 %v1751_v0  ;;  %1646 = vmatprep.subr.bf16.mxu1 %v1751_v0  ;;  %v1754_v3 = vld [vmem:[#allocation7 + $0x30] sm:$0xff]   ;;  %v1755_v4 = vld [vmem:[#allocation7 + $0x68] sm:$0xff]   ;;  %s2312_s16 = scalar_lea.vmem [#allocation8], %s1348_s14  ;;  %s2387_s26 = scalar_lea.hbm %s2445_s6, %s1438_s7 }
  0x52   : > { %1535 = vmatpush3.bf16.msra.mxu0 %v1752_v1  ;;  %1654 = vmatpush3.bf16.msra.mxu1 %v1752_v1  ;;  %v1756_v6 = vld [vmem:[#allocation7 + $0x28] sm:$0xff]   ;;  %v1757_v7 = vld [vmem:[#allocation7 + $0x60] sm:$0xff]   ;;  %v449_v8 = vshrl.u32 %v448_v5, 7  ;;  %v1759_v10 = vld [vmem:[#allocation7 + $0x58] sm:$0xff]   ;;  %s1204_s12 = sshll.u32 %s2312_s16, 4  ;;  %s1190_s24 = scalar_lea.sflag [#allocation4], %s2106_s20  ;;  %s2389_s12 = int_to_ptr.vmem [resolvable:$true] %s1204_s12 }
  0x53   : > { %1536 = vmatprep.subr.bf16.mxu0 %v1753_v2  ;;  %1647 = vmatprep.subr.bf16.mxu1 %v1753_v2  ;;  %v1758_v9 = vld [vmem:[#allocation7 + $0x20] sm:$0xff]   ;;  %v1760_v12 = vld [vmem:[#allocation7 + $0x18] sm:$0xff]   ;;  %v1761_v14 = vld [vmem:[#allocation7 + $0x50] sm:$0xff]   ;;  %s1847_s15 = scalar_lea.vmem %s2389_s12, 2048  ;;  %p2475_p7 = scmp.ne.s32.totalorder %s2462_s9, 0 }
  0x54   : > { %v450_v11 = vsub.s32 0, %v449_v8  ;;  %v454_v13 = vsub.s32 1, %v449_v8  ;;  %v350_v15 = vld [vmem:[%s2110_s28] sm:$0xff]  ;;  %v351_v16 = vld [vmem:[%s2110_s28 + $0x8] sm:$0xff]  ;;  %v352_v29 = vld [vmem:[%s2110_s28 + $0x10] sm:$0xff]  ;;  %p1848_p3 = scmp.ne.s32.totalorder %s2389_s12, %s1847_s15  ;;  %s1940_s27 = smov [#allocation8]  }
  0x55   : > { %v446_v17 = vld [vmem:[#allocation5] sm:$0x3]  ;;  %v382_v18 = vunpack.c.l.bf16 %v350_v15  ;;  %v383_v19 = vunpack.c.h.bf16 %v350_v15  ;;  %v384_v20 = vunpack.c.l.bf16 %v351_v16  ;;  %v385_v21 = vunpack.c.h.bf16 %v351_v16  ;;  %v367_v24 = vld [vmem:[%s2110_s28 + $0x88] sm:$0xff]  ;;  %v1762_v30 = vld [vmem:[#allocation7 + $0x10] sm:$0xff]   ;;  %s1851_s17 = sshll.u32 %s1940_s27, 4  ;;  %s1852_s17 = int_to_ptr.vmem [resolvable:$false] %s1851_s17 }
  0x56   : > { %1537 = vmatpush3.bf16.msra.mxu0 %v1754_v3  ;;  %1655 = vmatpush3.bf16.msra.mxu1 %v1754_v3  ;;  %v522_v22 = vld [vmem:[%s2441_s2] sm:$0x3]  ;;  %v2127_v25 = vrot.slane %v446_v17, %v450_v11  ;;  %v2129_v26 = vrot.slane %v446_v17, %v454_v13  ;;  %v416_v33 = vunpack.c.l.bf16 %v367_v24  ;;  %v417_v34 = vunpack.c.h.bf16 %v367_v24  ;;  %v1763_v35 = vld [vmem:[#allocation7 + $0x48] sm:$0xff]   ;;  %v353_v39 = vld [vmem:[%s2110_s28 + $0x18] sm:$0xff]  ;;  %p1849_p8 = pnand %p1848_p3, %p2475_p7  ;;  %p1854_p12 = scmp.lt.s32.totalorder %s2389_s12, %s1852_s17 }
  0x57   : > { %1538 = vmatprep.subr.bf16.mxu0 %v1755_v4  ;;  %1648 = vmatprep.subr.bf16.mxu1 %v1755_v4  ;;  %v366_v23 = vld [vmem:[%s2110_s28 + $0x80] sm:$0xff]  ;;  %v2131_v27 = vrot.slane %v522_v22, %v450_v11  ;;  %v2133_v28 = vrot.slane %v522_v22, %v454_v13  ;;  %v387_v40 = vunpack.c.h.bf16 %v352_v29  ;;  %v368_v45 = vld [vmem:[%s2110_s28 + $0x90] sm:$0xff]  ;;  %v389_v52 = vunpack.c.h.bf16 %v353_v39  ;;  %v369_v53 = vld [vmem:[%s2110_s28 + $0x98] sm:$0xff] }
  0x58   : > { %v414_v31 = vunpack.c.l.bf16 %v366_v23  ;;  %v415_v32 = vunpack.c.h.bf16 %v366_v23  ;;  %v459_v36 = vmul.f32 %v2129_v26, %v383_v19  ;;  %v461_v37 = vmul.f32 %v2129_v26, %v385_v21  ;;  %v1764_v49 = vld [vmem:[#allocation7 + $0x8] sm:$0xff]   ;;  %v1765_v54 = vld [vmem:[#allocation7 + $0x40] sm:$0xff]   ;;  %p1850_p9 = pneg %p1849_p8 }
  0x59   : > { %v458_v38 = vmul.f32 %v2127_v25, %v382_v18  ;;  %v493_v42 = vmul.f32 %v2129_v26, %v417_v34  ;;  %v460_v43 = vmul.f32 %v2127_v25, %v384_v20  ;;  %v492_v48 = vmul.f32 %v2127_v25, %v416_v33  ;;  %v354_v3 = vld [vmem:[%s2110_s28 + $0x20] sm:$0xff]  ;;  %v371_v19 = vld [vmem:[%s2110_s28 + $0xa8] sm:$0xff] }
  0x5a   : > { %1539 = vmatpush3.bf16.msra.mxu0 %v1756_v6  ;;  %1656 = vmatpush3.bf16.msra.mxu1 %v1756_v6  ;;  %v491_v41 = vmul.f32 %v2129_v26, %v415_v32  ;;  %v490_v44 = vmul.f32 %v2127_v25, %v414_v31  ;;  %v535_v46 = vadd.f32 %v2133_v28, %v459_v36  ;;  %v419_v58 = vunpack.c.h.bf16 %v368_v45  ;;  %v1766_v4 = vld [vmem:[#allocation7] sm:$0xff]  }
  0x5b   : > { %1540 = vmatprep.subr.bf16.mxu0 %v1757_v7  ;;  %1649 = vmatprep.subr.bf16.mxu1 %v1757_v7  ;;  %v537_v47 = vadd.f32 %v2133_v28, %v461_v37  ;;  %v569_v51 = vadd.f32 %v2133_v28, %v493_v42  ;;  %v534_v56 = vadd.f32 %v2131_v27, %v458_v38  ;;  %v421_v0 = vunpack.c.h.bf16 %v369_v53 }
  0x5c   : > { %v567_v50 = vadd.f32 %v2133_v28, %v491_v41  ;;  %v536_v57 = vadd.f32 %v2131_v27, %v460_v43  ;;  %v566_v60 = vadd.f32 %v2131_v27, %v490_v44  ;;  %v463_v61 = vmul.f32 %v2129_v26, %v387_v40  ;;  %v357_v44 = vld [vmem:[%s2110_s28 + $0x38] sm:$0xff] }
  0x5d   : > { %v599_v55 = vpack.c.bf16 %v537_v47, %v535_v46  ;;  %v465_v62 = vmul.f32 %v2129_v26, %v389_v52  ;;  %v568_v63 = vadd.f32 %v2131_v27, %v492_v48  ;;  %v495_v1 = vmul.f32 %v2129_v26, %v419_v58 }
  0x5e   : > { %1541 = vmatpush3.bf16.msra.mxu0 %v1758_v9  ;;  %1657 = vmatpush3.bf16.msra.mxu1 %v1758_v9  ;;  %v615_v59 = vpack.c.bf16 %v569_v51, %v567_v50  ;;  %v386_v2 = vunpack.c.l.bf16 %v352_v29  ;;  %v539_v5 = vadd.f32 %v2133_v28, %v463_v61  ;;  %v388_v7 = vunpack.c.l.bf16 %v353_v39  ;;  %v355_v9 = vld [vmem:[%s2110_s28 + $0x28] sm:$0xff]  ;;  %v356_v39 = vld [vmem:[%s2110_s28 + $0x30] sm:$0xff] }
  0x5f   : > { %1542 = vmatprep.subr.bf16.mxu0 %v1759_v10  ;;  %1650 = vmatprep.subr.bf16.mxu1 %v1759_v10  ;;  %v541_v6 = vadd.f32 %v2133_v28, %v465_v62  ;;  %v418_v8 = vunpack.c.l.bf16 %v368_v45  ;;  %v497_v10 = vmul.f32 %v2129_v26, %v421_v0  ;;  %v571_v11 = vadd.f32 %v2133_v28, %v495_v1 }
  0x60   : > { %790 = vmatprep.mubr.bf16.mxu0 %v599_v55  ;;  %v420_v13 = vunpack.c.l.bf16 %v369_v53  ;;  %854 = vmatprep.mubr.bf16.mxu1 %v615_v59  ;;  %v598_v15 = vpack.c.bf16 %v536_v57, %v534_v56  ;;  %v464_v16 = vmul.f32 %v2127_v25, %v388_v7  ;;  %v391_v18 = vunpack.c.h.bf16 %v354_v3  ;;  %v373_v53 = vld [vmem:[%s2110_s28 + $0xb8] sm:$0xff] }
  0x61   : > { %v494_v17 = vmul.f32 %v2127_v25, %v418_v8  ;;  %v614_v20 = vpack.c.bf16 %v568_v63, %v566_v60  ;;  %v573_v21 = vadd.f32 %v2133_v28, %v497_v10  ;;  %v393_v23 = vunpack.c.h.bf16 %v355_v9  ;;  %v359_v10 = vld [vmem:[%s2110_s28 + $0x48] sm:$0xff] }
  0x62   : > { %1543 = vmatpush3.bf16.msra.mxu0 %v1760_v12  ;;  %1658 = vmatpush3.bf16.msra.mxu1 %v1760_v12  ;;  %v462_v12 = vmul.f32 %v2127_v25, %v386_v2  ;;  %v496_v22 = vmul.f32 %v2127_v25, %v420_v13  ;;  %v601_v24 = vpack.c.bf16 %v541_v6, %v539_v5  ;;  %v425_v34 = vunpack.c.h.bf16 %v371_v19  ;;  %v358_v5 = vld [vmem:[%s2110_s28 + $0x40] sm:$0xff] }
  0x63   : > { %1544 = vmatprep.subr.bf16.mxu0 %v1761_v14  ;;  %1651 = vmatprep.subr.bf16.mxu1 %v1761_v14  ;;  %v370_v14 = vld [vmem:[%s2110_s28 + $0xa0] sm:$0xff]  ;;  %v467_v29 = vmul.f32 %v2129_v26, %v391_v18  ;;  %v617_v31 = vpack.c.bf16 %v573_v21, %v571_v11  ;;  %v469_v33 = vmul.f32 %v2129_v26, %v393_v23  ;;  %v390_v38 = vunpack.c.l.bf16 %v354_v3 }
  0x64   : > { %v538_v32 = vadd.f32 %v2131_v27, %v462_v12  ;;  %v570_v36 = vadd.f32 %v2131_v27, %v494_v17  ;;  %v572_v40 = vadd.f32 %v2131_v27, %v496_v22  ;;  %v501_v42 = vmul.f32 %v2129_v26, %v425_v34 }
  0x65   : > { %v543_v41 = vadd.f32 %v2133_v28, %v467_v29  ;;  %v392_v43 = vunpack.c.l.bf16 %v355_v9  ;;  %v545_v45 = vadd.f32 %v2133_v28, %v469_v33  ;;  %v422_v47 = vunpack.c.l.bf16 %v370_v14 }
  0x66   : > { %1545 = vmatpush3.bf16.msra.mxu0 %v1762_v30  ;;  %1659 = vmatpush3.bf16.msra.mxu1 %v1762_v30  ;;  %v423_v30 = vunpack.c.h.bf16 %v370_v14  ;;  %v424_v48 = vunpack.c.l.bf16 %v371_v19  ;;  %v577_v50 = vadd.f32 %v2133_v28, %v501_v42  ;;  %v466_v51 = vmul.f32 %v2127_v25, %v390_v38 }
  0x67   : > { %1546 = vmatprep.subr.bf16.mxu0 %v1763_v35  ;;  %1652 = vmatprep.subr.bf16.mxu1 %v1763_v35  ;;  %v540_v35 = vadd.f32 %v2131_v27, %v464_v16  ;;  %v395_v52 = vunpack.c.h.bf16 %v356_v39  ;;  %v468_v55 = vmul.f32 %v2127_v25, %v392_v43  ;;  %v498_v56 = vmul.f32 %v2127_v25, %v422_v47 }
  0x68   : > { %v499_v37 = vmul.f32 %v2129_v26, %v423_v30  ;;  %v397_v57 = vunpack.c.h.bf16 %v357_v44  ;;  %v616_v58 = vpack.c.bf16 %v572_v40, %v570_v36  ;;  %v500_v59 = vmul.f32 %v2127_v25, %v424_v48 }
  0x69   : > { %v471_v60 = vmul.f32 %v2129_v26, %v395_v52  ;;  %v603_v62 = vpack.c.bf16 %v545_v45, %v543_v41  ;;  %v429_v1 = vunpack.c.h.bf16 %v373_v53  ;;  %v542_v2 = vadd.f32 %v2131_v27, %v466_v51 }
  0x6a   : > { %1547 = vmatpush3.bf16.msra.mxu0 %v1764_v49  ;;  %1660 = vmatpush3.bf16.msra.mxu1 %v1764_v49  ;;  %v575_v46 = vadd.f32 %v2133_v28, %v499_v37  ;;  %v372_v49 = vld [vmem:[%s2110_s28 + $0xb0] sm:$0xff]  ;;  %v473_v0 = vmul.f32 %v2129_v26, %v397_v57  ;;  %v544_v6 = vadd.f32 %v2131_v27, %v468_v55  ;;  %v396_v9 = vunpack.c.l.bf16 %v357_v44  ;;  %v361_v44 = vld [vmem:[%s2110_s28 + $0x58] sm:$0xff] }
  0x6b   : > { %1548 = vmatprep.subr.bf16.mxu0 %v1765_v54  ;;  %1653 = vmatprep.subr.bf16.mxu1 %v1765_v54  ;;  %v600_v54 = vpack.c.bf16 %v540_v35, %v538_v32  ;;  %v427_v61 = vunpack.c.h.bf16 %v372_v49  ;;  %v574_v7 = vadd.f32 %v2131_v27, %v498_v56  ;;  %v505_v8 = vmul.f32 %v2129_v26, %v429_v1 }
  0x6c   : > { %v619_v63 = vpack.c.bf16 %v577_v50, %v575_v46  ;;  %v576_v11 = vadd.f32 %v2131_v27, %v500_v59  ;;  %v547_v12 = vadd.f32 %v2133_v28, %v471_v60  ;;  %v426_v13 = vunpack.c.l.bf16 %v372_v49  ;;  %v376_v49 = vld [vmem:[%s2110_s28 + $0xd0] sm:$0xff] }
  0x6d   : > { %v503_v3 = vmul.f32 %v2129_v26, %v427_v61  ;;  %v428_v14 = vunpack.c.l.bf16 %v373_v53  ;;  %v549_v16 = vadd.f32 %v2133_v28, %v473_v0  ;;  %v581_v18 = vadd.f32 %v2133_v28, %v505_v8  ;;  %v362_v8 = vld [vmem:[%s2110_s28 + $0x60] sm:$0xff] }
  0x6e   : > { %1549 = vmatpush3.bf16.msra.mxu0 %v1766_v4  ;;  %1661 = vmatpush3.bf16.msra.mxu1 %v1766_v4  ;;  %v394_v4 = vunpack.c.l.bf16 %v356_v39  ;;  %v399_v19 = vunpack.c.h.bf16 %v358_v5  ;;  %v472_v22 = vmul.f32 %v2127_v25, %v396_v9  ;;  %v502_v23 = vmul.f32 %v2127_v25, %v426_v13  ;;  %v360_v39 = vld [vmem:[%s2110_s28 + $0x50] sm:$0xff]  ;;  %v363_v9 = vld [vmem:[%s2110_s28 + $0x68] sm:$0xff]  ;;  %v378_v13 = vld [vmem:[%s2110_s28 + $0xe0] sm:$0xff] }
  0x6f   : > { %v579_v17 = vadd.f32 %v2133_v28, %v503_v3  ;;  %v602_v29 = vpack.c.bf16 %v544_v6, %v542_v2  ;;  %v504_v30 = vmul.f32 %v2127_v25, %v428_v14  ;;  %v618_v32 = vpack.c.bf16 %v576_v11, %v574_v7 }
  0x70   : > { %v470_v21 = vmul.f32 %v2127_v25, %v394_v4  ;;  %v475_v33 = vmul.f32 %v2129_v26, %v399_v19  ;;  %v605_v36 = vpack.c.bf16 %v549_v16, %v547_v12  ;;  %v548_v41 = vadd.f32 %v2131_v27, %v472_v22 }
  0x71   : > { %791 = vmatmul.mubr.bf16.vlgmr.msra.gmra.mxu0 %v598_v15  ;;  %855 = vmatmul.mubr.bf16.vlgmr.msra.gmra.mxu1 %v614_v20  ;;  %v374_v15 = vld [vmem:[%s2110_s28 + $0xc0] sm:$0xff]  ;;  %v375_v20 = vld [vmem:[%s2110_s28 + $0xc8] sm:$0xff]  ;;  %v621_v37 = vpack.c.bf16 %v581_v18, %v579_v17  ;;  %v578_v42 = vadd.f32 %v2131_v27, %v502_v23  ;;  %v580_v45 = vadd.f32 %v2131_v27, %v504_v30  ;;  %v398_v46 = vunpack.c.l.bf16 %v358_v5 }
  0x72   : > { %798 = vmatprep.mubr.bf16.mxu0 %v601_v24  ;;  %862 = vmatprep.mubr.bf16.mxu1 %v617_v31  ;;  %v401_v24 = vunpack.c.h.bf16 %v359_v10  ;;  %v431_v31 = vunpack.c.h.bf16 %v374_v15  ;;  %v433_v35 = vunpack.c.h.bf16 %v375_v20  ;;  %v546_v40 = vadd.f32 %v2131_v27, %v470_v21  ;;  %v379_v18 = vld [vmem:[%s2110_s28 + $0xe8] sm:$0xff] }
  0x73   : > { %v400_v47 = vunpack.c.l.bf16 %v359_v10  ;;  %v430_v48 = vunpack.c.l.bf16 %v374_v15  ;;  %v551_v50 = vadd.f32 %v2133_v28, %v475_v33  ;;  %v432_v52 = vunpack.c.l.bf16 %v375_v20 }
  0x74   : > { %v477_v34 = vmul.f32 %v2129_v26, %v401_v24  ;;  %v507_v38 = vmul.f32 %v2129_v26, %v431_v31  ;;  %v509_v43 = vmul.f32 %v2129_v26, %v433_v35  ;;  %v403_v53 = vunpack.c.h.bf16 %v360_v39 }
  0x75   : > { %v405_v57 = vunpack.c.h.bf16 %v361_v44  ;;  %v435_v59 = vunpack.c.h.bf16 %v376_v49  ;;  %v474_v60 = vmul.f32 %v2127_v25, %v398_v46  ;;  %v476_v61 = vmul.f32 %v2127_v25, %v400_v47 }
  0x76   : > { %v553_v51 = vadd.f32 %v2133_v28, %v477_v34  ;;  %v583_v55 = vadd.f32 %v2133_v28, %v507_v38  ;;  %v585_v56 = vadd.f32 %v2133_v28, %v509_v43  ;;  %v620_v0 = vpack.c.bf16 %v580_v45, %v578_v42 }
  0x77   : > { %v508_v2 = vmul.f32 %v2127_v25, %v432_v52  ;;  %v479_v3 = vmul.f32 %v2129_v26, %v403_v53  ;;  %v481_v5 = vmul.f32 %v2129_v26, %v405_v57  ;;  %v511_v6 = vmul.f32 %v2129_v26, %v435_v59 }
  0x78   : > { %v607_v1 = vpack.c.bf16 %v553_v51, %v551_v50  ;;  %v623_v4 = vpack.c.bf16 %v585_v56, %v583_v55  ;;  %v402_v10 = vunpack.c.l.bf16 %v360_v39  ;;  %v404_v11 = vunpack.c.l.bf16 %v361_v44  ;;  %v364_v44 = vld [vmem:[%s2110_s28 + $0x70] sm:$0xff]  ;;  %v381_v51 = vld [vmem:[%s2110_s28 + $0xf8] sm:$0xff] }
  0x79   : > { %799 = vmatmul.mubr.bf16.gmra.mxu0 %v600_v54  ;;  %863 = vmatmul.mubr.bf16.gmra.mxu1 %v616_v58  ;;  %v377_v54 = vld [vmem:[%s2110_s28 + $0xd8] sm:$0xff]  ;;  %v604_v58 = vpack.c.bf16 %v548_v41, %v546_v40  ;;  %v434_v12 = vunpack.c.l.bf16 %v376_v49  ;;  %v550_v14 = vadd.f32 %v2131_v27, %v474_v60  ;;  %v552_v15 = vadd.f32 %v2131_v27, %v476_v61  ;;  %v380_v50 = vld [vmem:[%s2110_s28 + $0xf0] sm:$0xff] }
  0x7a   : > { %806 = vmatprep.mubr.bf16.mxu0 %v603_v62  ;;  %870 = vmatprep.mubr.bf16.mxu1 %v619_v63  ;;  %v506_v62 = vmul.f32 %v2127_v25, %v430_v48  ;;  %v437_v63 = vunpack.c.h.bf16 %v377_v54  ;;  %v436_v17 = vunpack.c.l.bf16 %v377_v54  ;;  %v584_v19 = vadd.f32 %v2131_v27, %v508_v2  ;;  %v365_v49 = vld [vmem:[%s2110_s28 + $0x78] sm:$0xff]  ;;  %s1853_s28 = scalar_lea.vmem %s1852_s17, 4096 }
  0x7b   : > { %v555_v20 = vadd.f32 %v2133_v28, %v479_v3  ;;  %v407_v21 = vunpack.c.h.bf16 %v362_v8  ;;  %v409_v22 = vunpack.c.h.bf16 %v363_v9  ;;  %v557_v23 = vadd.f32 %v2133_v28, %v481_v5  ;;  %p1855_p13 = scmp.lt.s32.totalorder %s1853_s28, %s1847_s15 }
  0x7c   : > { %v513_v7 = vmul.f32 %v2129_v26, %v437_v63  ;;  %v582_v16 = vadd.f32 %v2131_v27, %v506_v62  ;;  %v587_v24 = vadd.f32 %v2133_v28, %v511_v6  ;;  %v439_v30 = vunpack.c.h.bf16 %v378_v13 }
  0x7d   : > { %v478_v31 = vmul.f32 %v2127_v25, %v402_v10  ;;  %v510_v33 = vmul.f32 %v2127_v25, %v434_v12  ;;  %v441_v34 = vunpack.c.h.bf16 %v379_v18  ;;  %v606_v35 = vpack.c.bf16 %v552_v15, %v550_v14  ;;  %p1856_p4 = por %p1855_p13, %p1854_p12 }
  0x7e   : > { %v483_v38 = vmul.f32 %v2129_v26, %v407_v21  ;;  %v485_v39 = vmul.f32 %v2129_v26, %v409_v22  ;;  %v515_v40 = vmul.f32 %v2129_v26, %v439_v30  ;;  %v609_v41 = vpack.c.bf16 %v557_v23, %v555_v20 }
  0x7f   : > { %v517_v43 = vmul.f32 %v2129_v26, %v441_v34  ;;  %v554_v45 = vadd.f32 %v2131_v27, %v478_v31  ;;  %v586_v47 = vadd.f32 %v2131_v27, %v510_v33  ;;  %v406_v48 = vunpack.c.l.bf16 %v362_v8  ;;  %p1857_p2 = pnand %p1856_p4, %p1850_p9 }
  0x80   : > { %v408_v53 = vunpack.c.l.bf16 %v363_v9  ;;  %v438_v54 = vunpack.c.l.bf16 %v378_v13  ;;  %v440_v55 = vunpack.c.l.bf16 %v379_v18  ;;  %v559_v56 = vadd.f32 %v2133_v28, %v483_v38 }
  0x81   : > { %807 = vmatmul.mubr.bf16.gmra.mxu0 %v602_v29  ;;  %871 = vmatmul.mubr.bf16.gmra.mxu1 %v618_v32  ;;  %v589_v29 = vadd.f32 %v2133_v28, %v513_v7  ;;  %v480_v32 = vmul.f32 %v2127_v25, %v404_v11  ;;  %v561_v57 = vadd.f32 %v2133_v28, %v485_v39  ;;  %v411_v59 = vunpack.c.h.bf16 %v364_v44 }
  0x82   : > { %814 = vmatprep.mubr.bf16.mxu0 %v605_v36  ;;  %878 = vmatprep.mubr.bf16.mxu1 %v621_v37  ;;  %v512_v36 = vmul.f32 %v2127_v25, %v436_v17  ;;  %v622_v37 = vpack.c.bf16 %v584_v19, %v582_v16  ;;  %v593_v60 = vadd.f32 %v2133_v28, %v517_v43  ;;  %v413_v61 = vunpack.c.h.bf16 %v365_v49 }
  0x83   : > { %v625_v42 = vpack.c.bf16 %v589_v29, %v587_v24  ;;  %v556_v46 = vadd.f32 %v2131_v27, %v480_v32  ;;  %v443_v62 = vunpack.c.h.bf16 %v380_v50  ;;  %v445_v63 = vunpack.c.h.bf16 %v381_v51 }
  0x84   : > { %v588_v52 = vadd.f32 %v2131_v27, %v512_v36  ;;  %v514_v2 = vmul.f32 %v2127_v25, %v438_v54  ;;  %v516_v3 = vmul.f32 %v2127_v25, %v440_v55  ;;  %v611_v6 = vpack.c.bf16 %v561_v57, %v559_v56 }
  0x85   : > { %v487_v7 = vmul.f32 %v2129_v26, %v411_v59  ;;  %v489_v9 = vmul.f32 %v2129_v26, %v413_v61  ;;  %v519_v10 = vmul.f32 %v2129_v26, %v443_v62  ;;  %v521_v11 = vmul.f32 %v2129_v26, %v445_v63 }
  0x86   : > { %v624_v5 = vpack.c.bf16 %v588_v52, %v586_v47  ;;  %v590_v14 = vadd.f32 %v2131_v27, %v514_v2  ;;  %v592_v15 = vadd.f32 %v2131_v27, %v516_v3  ;;  %v410_v16 = vunpack.c.l.bf16 %v364_v44 }
  0x87   : > { %v563_v17 = vadd.f32 %v2133_v28, %v487_v7  ;;  %v412_v18 = vunpack.c.l.bf16 %v365_v49  ;;  %v442_v19 = vunpack.c.l.bf16 %v380_v50  ;;  %v444_v20 = vunpack.c.l.bf16 %v381_v51  ;;  %v2301_v49 = vld [vmem:[%s2444_s5] ss:$0 sm:$0xff] }
  0x88   : > { %v565_v26 = vadd.f32 %v2133_v28, %v489_v9  ;;  %v595_v21 = vadd.f32 %v2133_v28, %v519_v10  ;;  %v597_v22 = vadd.f32 %v2133_v28, %v521_v11  ;;  %v486_v24 = vmul.f32 %v2127_v25, %v410_v16 }
  0x89   : > { %815 = vmatmul.mubr.bf16.gmra.mxu0 %v604_v58  ;;  %879 = vmatmul.mubr.bf16.gmra.mxu1 %v620_v0  ;;  %v591_v58 = vadd.f32 %v2133_v28, %v515_v40  ;;  %v482_v0 = vmul.f32 %v2127_v25, %v406_v48  ;;  %v626_v29 = vpack.c.bf16 %v592_v15, %v590_v14 }
  0x8a   : > { %822 = vmatprep.mubr.bf16.mxu0 %v607_v1  ;;  %886 = vmatprep.mubr.bf16.mxu1 %v623_v4  ;;  %v484_v1 = vmul.f32 %v2127_v25, %v408_v53  ;;  %v608_v4 = vpack.c.bf16 %v556_v46, %v554_v45  ;;  %v488_v30 = vmul.f32 %v2127_v25, %v412_v18 }
  0x8b   : > { %v627_v8 = vpack.c.bf16 %v593_v60, %v591_v58  ;;  %v558_v12 = vadd.f32 %v2131_v27, %v482_v0  ;;  %v518_v31 = vmul.f32 %v2127_v25, %v442_v19  ;;  %v520_v32 = vmul.f32 %v2127_v25, %v444_v20 }
  0x8c   : > { %v560_v13 = vadd.f32 %v2131_v27, %v484_v1  ;;  %v613_v33 = vpack.c.bf16 %v565_v26, %v563_v17  ;;  %v629_v34 = vpack.c.bf16 %v597_v22, %v595_v21  ;;  %v564_v36 = vadd.f32 %v2131_v27, %v488_v30 }
  0x8d   : > { %v594_v28 = vadd.f32 %v2131_v27, %v518_v31 }
  0x8e   : > { %v610_v23 = vpack.c.bf16 %v560_v13, %v558_v12 }
  0x91   : > { %823 = vmatmul.mubr.bf16.gmra.mxu0 %v606_v35  ;;  %887 = vmatmul.mubr.bf16.gmra.mxu1 %v622_v37  ;;  %v562_v35 = vadd.f32 %v2131_v27, %v486_v24  ;;  %v596_v37 = vadd.f32 %v2131_v27, %v520_v32 }
  0x92   : > { %830 = vmatprep.mubr.bf16.mxu0 %v609_v41  ;;  %894 = vmatprep.mubr.bf16.mxu1 %v625_v42  ;;  %v2294_v42 = vld [vmem:[%s2443_s4] ss:$0 sm:$0xff] }
  0x93   : > { %v612_v38 = vpack.c.bf16 %v564_v36, %v562_v35  ;;  %v628_v39 = vpack.c.bf16 %v596_v37, %v594_v28 }
  0x99   : > { %831 = vmatmul.mubr.bf16.gmra.mxu0 %v608_v4  ;;  %895 = vmatmul.mubr.bf16.gmra.mxu1 %v624_v5 }
  0x9a   : > { %838 = vmatprep.mubr.bf16.mxu0 %v611_v6  ;;  %902 = vmatprep.mubr.bf16.mxu1 %v627_v8 }
  0xa1   : > { %839 = vmatmul.mubr.bf16.gmra.mxu0 %v610_v23  ;;  %903 = vmatmul.mubr.bf16.gmra.mxu1 %v626_v29 }
  0xa2   : > { %846 = vmatprep.mubr.bf16.mxu0 %v613_v33  ;;  %910 = vmatprep.mubr.bf16.mxu1 %v629_v34 }
  0xa9   : > { %847 = vmatmul.mubr.bf16.gmra.mxu0 %v612_v38  ;;  %911 = vmatmul.mubr.bf16.gmra.mxu1 %v628_v39 }
 0x131   : > { %v1550_v40 = vpop.f32.mrf.mxu0  ;;  %v1598_v25 = vpop.f32.mrf.mxu1 }
 0x133   : > { %v1551_v41 = vpop.f32.mrf.mxu0  ;;  %v1599_v43 = vpop.f32.mrf.mxu1 }
 0x134   : > { %v1552_v44 = vadd.f32 %v1551_v41, %v1550_v40  ;;  %v1600_v45 = vadd.f32 %v1599_v43, %v1598_v25 }
 0x135   : > { %v1553_v46 = vpop.f32.mrf.mxu0  ;;  %v1601_v47 = vpop.f32.mrf.mxu1 }
 0x136   : > { %v926_v27 = vmul.f32 %v1552_v44, %v2294_v42  ;;  %v942_v48 = vmul.f32 %v1600_v45, %v2294_v42 }
 0x137   : > { %v1554_v50 = vpop.f32.mrf.mxu0  ;;  %v1602_v51 = vpop.f32.mrf.mxu1 }
 0x138   : > { %v1555_v52 = vadd.f32 %v1554_v50, %v1553_v46  ;;  %v1603_v53 = vadd.f32 %v1602_v51, %v1601_v47  ;;  %v965_v56 = vadd.f32 %v2301_v49, %v926_v27  ;;  %v981_v57 = vadd.f32 %v2301_v49, %v942_v48 }
 0x139   : > { %v1556_v54 = vpop.f32.mrf.mxu0  ;;  %v1604_v55 = vpop.f32.mrf.mxu1 }
 0x13a   : > { %v927_v58 = vmul.f32 %v1555_v52, %v2294_v42  ;;  %v943_v59 = vmul.f32 %v1603_v53, %v2294_v42  ;;  %v997_v4 = vmax.f32 %v965_v56, 0.0  ;;  %v1013_v5 = vmax.f32 %v981_v57, 0.0 }
 0x13b   : > { %v1557_v60 = vpop.f32.mrf.mxu0  ;;  %v1605_v61 = vpop.f32.mrf.mxu1 }
 0x13c   : > { %v966_v62 = vadd.f32 %v2301_v49, %v927_v58  ;;  %v982_v63 = vadd.f32 %v2301_v49, %v943_v59  ;;  %v1558_v0 = vadd.f32 %v1557_v60, %v1556_v54  ;;  %v1606_v1 = vadd.f32 %v1605_v61, %v1604_v55 }
 0x13d   : > { %v1559_v2 = vpop.f32.mrf.mxu0  ;;  %v1607_v3 = vpop.f32.mrf.mxu1 }
 0x13e   : > { %v998_v6 = vmax.f32 %v966_v62, 0.0  ;;  %v1014_v7 = vmax.f32 %v982_v63, 0.0  ;;  %v928_v8 = vmul.f32 %v1558_v0, %v2294_v42  ;;  %v944_v9 = vmul.f32 %v1606_v1, %v2294_v42 }
 0x13f   : > { %v1560_v10 = vpop.f32.mrf.mxu0  ;;  %v1608_v11 = vpop.f32.mrf.mxu1 }
 0x140   : > { %v1442_v12 = vpack.c.bf16 %v998_v6, %v997_v4  ;;  %v1482_v13 = vpack.c.bf16 %v1014_v7, %v1013_v5  ;;  %v1561_v14 = vadd.f32 %v1560_v10, %v1559_v2  ;;  %v1609_v15 = vadd.f32 %v1608_v11, %v1607_v3 }
 0x141   : > { %v1562_v16 = vpop.f32.mrf.mxu0  ;;  %v1610_v17 = vpop.f32.mrf.mxu1  ;;  %v967_v18 = vadd.f32 %v2301_v49, %v928_v8  ;;  %v983_v19 = vadd.f32 %v2301_v49, %v944_v9 }
 0x142   : > { %1443 = vst [vmem:[%s2312_s16] sm:$0xff] %v1442_v12   ;;  %1526 = vst [vmem:[%s2312_s16 + $0x40] sm:$0xff] %v1482_v13   ;;  %v929_v20 = vmul.f32 %v1561_v14, %v2294_v42  ;;  %v945_v26 = vmul.f32 %v1609_v15, %v2294_v42 }
 0x143   : > { %v1563_v21 = vpop.f32.mrf.mxu0  ;;  %v1611_v22 = vpop.f32.mrf.mxu1  ;;  %v999_v35 = vmax.f32 %v967_v18, 0.0  ;;  %v1015_v36 = vmax.f32 %v983_v19, 0.0 }
 0x144   : > { %v1564_v23 = vadd.f32 %v1563_v21, %v1562_v16  ;;  %v1612_v24 = vadd.f32 %v1611_v22, %v1610_v17  ;;  %v968_v29 = vadd.f32 %v2301_v49, %v929_v20  ;;  %v984_v30 = vadd.f32 %v2301_v49, %v945_v26 }
 0x145   : > { %v1565_v31 = vpop.f32.mrf.mxu0  ;;  %v1613_v32 = vpop.f32.mrf.mxu1 }
 0x146   : > { %v930_v33 = vmul.f32 %v1564_v23, %v2294_v42  ;;  %v946_v34 = vmul.f32 %v1612_v24, %v2294_v42  ;;  %v1000_v28 = vmax.f32 %v968_v29, 0.0  ;;  %v1016_v37 = vmax.f32 %v984_v30, 0.0 }
 0x147   : > { %v1566_v38 = vpop.f32.mrf.mxu0  ;;  %v1614_v39 = vpop.f32.mrf.mxu1 }
 0x148   : > { %v1567_v40 = vadd.f32 %v1566_v38, %v1565_v31  ;;  %v1615_v25 = vadd.f32 %v1614_v39, %v1613_v32  ;;  %v1447_v41 = vpack.c.bf16 %v1000_v28, %v999_v35  ;;  %v1487_v43 = vpack.c.bf16 %v1016_v37, %v1015_v36 }
 0x149   : > { %v1568_v44 = vpop.f32.mrf.mxu0  ;;  %v1616_v45 = vpop.f32.mrf.mxu1  ;;  %v969_v46 = vadd.f32 %v2301_v49, %v930_v33  ;;  %v985_v47 = vadd.f32 %v2301_v49, %v946_v34 }
 0x14a   : > { %v931_v27 = vmul.f32 %v1567_v40, %v2294_v42  ;;  %v947_v48 = vmul.f32 %v1615_v25, %v2294_v42  ;;  %1519 = vst [vmem:[%s2312_s16 + $0x8] sm:$0xff] %v1447_v41   ;;  %1527 = vst [vmem:[%s2312_s16 + $0x48] sm:$0xff] %v1487_v43  }
 0x14b   : > { %v1569_v50 = vpop.f32.mrf.mxu0  ;;  %v1617_v51 = vpop.f32.mrf.mxu1  ;;  %v1001_v58 = vmax.f32 %v969_v46, 0.0  ;;  %v1017_v59 = vmax.f32 %v985_v47, 0.0 }
 0x14c   : > { %v970_v52 = vadd.f32 %v2301_v49, %v931_v27  ;;  %v986_v53 = vadd.f32 %v2301_v49, %v947_v48  ;;  %v1570_v54 = vadd.f32 %v1569_v50, %v1568_v44  ;;  %v1618_v55 = vadd.f32 %v1617_v51, %v1616_v45 }
 0x14d   : > { %v1571_v56 = vpop.f32.mrf.mxu0  ;;  %v1619_v57 = vpop.f32.mrf.mxu1 }
 0x14e   : > { %v1002_v60 = vmax.f32 %v970_v52, 0.0  ;;  %v1018_v61 = vmax.f32 %v986_v53, 0.0  ;;  %v932_v62 = vmul.f32 %v1570_v54, %v2294_v42  ;;  %v948_v63 = vmul.f32 %v1618_v55, %v2294_v42 }
 0x14f   : > { %v1572_v0 = vpop.f32.mrf.mxu0  ;;  %v1620_v1 = vpop.f32.mrf.mxu1 }
 0x150   : > { %v1452_v2 = vpack.c.bf16 %v1002_v60, %v1001_v58  ;;  %v1492_v3 = vpack.c.bf16 %v1018_v61, %v1017_v59  ;;  %v1573_v4 = vadd.f32 %v1572_v0, %v1571_v56  ;;  %v1621_v5 = vadd.f32 %v1620_v1, %v1619_v57 }
 0x151   : > { %v1574_v6 = vpop.f32.mrf.mxu0  ;;  %v1622_v7 = vpop.f32.mrf.mxu1  ;;  %v971_v8 = vadd.f32 %v2301_v49, %v932_v62  ;;  %v987_v9 = vadd.f32 %v2301_v49, %v948_v63 }
 0x152   : > { %1520 = vst [vmem:[%s2312_s16 + $0x10] sm:$0xff] %v1452_v2   ;;  %1528 = vst [vmem:[%s2312_s16 + $0x50] sm:$0xff] %v1492_v3   ;;  %v933_v10 = vmul.f32 %v1573_v4, %v2294_v42  ;;  %v949_v11 = vmul.f32 %v1621_v5, %v2294_v42 }
 0x153   : > { %v1575_v12 = vpop.f32.mrf.mxu0  ;;  %v1623_v13 = vpop.f32.mrf.mxu1  ;;  %v1003_v21 = vmax.f32 %v971_v8, 0.0  ;;  %v1019_v22 = vmax.f32 %v987_v9, 0.0 }
 0x154   : > { %v1576_v14 = vadd.f32 %v1575_v12, %v1574_v6  ;;  %v1624_v15 = vadd.f32 %v1623_v13, %v1622_v7  ;;  %v972_v16 = vadd.f32 %v2301_v49, %v933_v10  ;;  %v988_v17 = vadd.f32 %v2301_v49, %v949_v11 }
 0x155   : > { %v1577_v18 = vpop.f32.mrf.mxu0  ;;  %v1625_v19 = vpop.f32.mrf.mxu1 }
 0x156   : > { %v934_v20 = vmul.f32 %v1576_v14, %v2294_v42  ;;  %v950_v26 = vmul.f32 %v1624_v15, %v2294_v42  ;;  %v1004_v23 = vmax.f32 %v972_v16, 0.0  ;;  %v1020_v24 = vmax.f32 %v988_v17, 0.0 }
 0x157   : > { %v1578_v29 = vpop.f32.mrf.mxu0  ;;  %v1626_v30 = vpop.f32.mrf.mxu1 }
 0x158   : > { %v1579_v31 = vadd.f32 %v1578_v29, %v1577_v18  ;;  %v1627_v32 = vadd.f32 %v1626_v30, %v1625_v19  ;;  %v1457_v33 = vpack.c.bf16 %v1004_v23, %v1003_v21  ;;  %v1497_v34 = vpack.c.bf16 %v1020_v24, %v1019_v22 }
 0x159   : > { %v1580_v35 = vpop.f32.mrf.mxu0  ;;  %v1628_v36 = vpop.f32.mrf.mxu1  ;;  %v973_v28 = vadd.f32 %v2301_v49, %v934_v20  ;;  %v989_v37 = vadd.f32 %v2301_v49, %v950_v26 }
 0x15a   : > { %v935_v38 = vmul.f32 %v1579_v31, %v2294_v42  ;;  %v951_v39 = vmul.f32 %v1627_v32, %v2294_v42  ;;  %1521 = vst [vmem:[%s2312_s16 + $0x18] sm:$0xff] %v1457_v33   ;;  %1529 = vst [vmem:[%s2312_s16 + $0x58] sm:$0xff] %v1497_v34  }
 0x15b   : > { %v1581_v40 = vpop.f32.mrf.mxu0  ;;  %v1629_v25 = vpop.f32.mrf.mxu1  ;;  %v1005_v27 = vmax.f32 %v973_v28, 0.0  ;;  %v1021_v48 = vmax.f32 %v989_v37, 0.0 }
 0x15c   : > { %v974_v41 = vadd.f32 %v2301_v49, %v935_v38  ;;  %v990_v43 = vadd.f32 %v2301_v49, %v951_v39  ;;  %v1582_v44 = vadd.f32 %v1581_v40, %v1580_v35  ;;  %v1630_v45 = vadd.f32 %v1629_v25, %v1628_v36 }
 0x15d   : > { %v1583_v46 = vpop.f32.mrf.mxu0  ;;  %v1631_v47 = vpop.f32.mrf.mxu1 }
 0x15e   : > { %v1006_v50 = vmax.f32 %v974_v41, 0.0  ;;  %v1022_v51 = vmax.f32 %v990_v43, 0.0  ;;  %v936_v52 = vmul.f32 %v1582_v44, %v2294_v42  ;;  %v952_v53 = vmul.f32 %v1630_v45, %v2294_v42 }
 0x15f   : > { %v1584_v54 = vpop.f32.mrf.mxu0  ;;  %v1632_v55 = vpop.f32.mrf.mxu1 }
 0x160   : > { %v1462_v56 = vpack.c.bf16 %v1006_v50, %v1005_v27  ;;  %v1502_v57 = vpack.c.bf16 %v1022_v51, %v1021_v48  ;;  %v1585_v58 = vadd.f32 %v1584_v54, %v1583_v46  ;;  %v1633_v59 = vadd.f32 %v1632_v55, %v1631_v47 }
 0x161   : > { %v1586_v60 = vpop.f32.mrf.mxu0  ;;  %v1634_v61 = vpop.f32.mrf.mxu1  ;;  %v975_v62 = vadd.f32 %v2301_v49, %v936_v52  ;;  %v991_v63 = vadd.f32 %v2301_v49, %v952_v53 }
 0x162   : > { %1522 = vst [vmem:[%s2312_s16 + $0x20] sm:$0xff] %v1462_v56   ;;  %1530 = vst [vmem:[%s2312_s16 + $0x60] sm:$0xff] %v1502_v57   ;;  %v937_v0 = vmul.f32 %v1585_v58, %v2294_v42  ;;  %v953_v1 = vmul.f32 %v1633_v59, %v2294_v42 }
 0x163   : > { %v1587_v2 = vpop.f32.mrf.mxu0  ;;  %v1635_v3 = vpop.f32.mrf.mxu1  ;;  %v1007_v12 = vmax.f32 %v975_v62, 0.0  ;;  %v1023_v13 = vmax.f32 %v991_v63, 0.0 }
 0x164   : > { %v1588_v4 = vadd.f32 %v1587_v2, %v1586_v60  ;;  %v1636_v5 = vadd.f32 %v1635_v3, %v1634_v61  ;;  %v976_v6 = vadd.f32 %v2301_v49, %v937_v0  ;;  %v992_v7 = vadd.f32 %v2301_v49, %v953_v1 }
 0x165   : > { %v1589_v8 = vpop.f32.mrf.mxu0  ;;  %v1637_v9 = vpop.f32.mrf.mxu1 }
 0x166   : > { %v938_v10 = vmul.f32 %v1588_v4, %v2294_v42  ;;  %v954_v11 = vmul.f32 %v1636_v5, %v2294_v42  ;;  %v1008_v14 = vmax.f32 %v976_v6, 0.0  ;;  %v1024_v15 = vmax.f32 %v992_v7, 0.0 }
 0x167   : > { %v1590_v16 = vpop.f32.mrf.mxu0  ;;  %v1638_v17 = vpop.f32.mrf.mxu1 }
 0x168   : > { %v1591_v18 = vadd.f32 %v1590_v16, %v1589_v8  ;;  %v1639_v19 = vadd.f32 %v1638_v17, %v1637_v9  ;;  %v1467_v20 = vpack.c.bf16 %v1008_v14, %v1007_v12  ;;  %v1507_v26 = vpack.c.bf16 %v1024_v15, %v1023_v13 }
 0x169   : > { %v1592_v21 = vpop.f32.mrf.mxu0  ;;  %v1640_v22 = vpop.f32.mrf.mxu1  ;;  %v977_v23 = vadd.f32 %v2301_v49, %v938_v10  ;;  %v993_v24 = vadd.f32 %v2301_v49, %v954_v11 }
 0x16a   : > { %v939_v29 = vmul.f32 %v1591_v18, %v2294_v42  ;;  %v955_v30 = vmul.f32 %v1639_v19, %v2294_v42  ;;  %1523 = vst [vmem:[%s2312_s16 + $0x28] sm:$0xff] %v1467_v20   ;;  %1531 = vst [vmem:[%s2312_s16 + $0x68] sm:$0xff] %v1507_v26  }
 0x16b   : > { %v1593_v31 = vpop.f32.mrf.mxu0  ;;  %v1641_v32 = vpop.f32.mrf.mxu1  ;;  %v1009_v38 = vmax.f32 %v977_v23, 0.0  ;;  %v1025_v39 = vmax.f32 %v993_v24, 0.0 }
 0x16c   : > { %v978_v33 = vadd.f32 %v2301_v49, %v939_v29  ;;  %v994_v34 = vadd.f32 %v2301_v49, %v955_v30  ;;  %v1594_v35 = vadd.f32 %v1593_v31, %v1592_v21  ;;  %v1642_v36 = vadd.f32 %v1641_v32, %v1640_v22 }
 0x16d   : > { %v1595_v28 = vpop.f32.mrf.mxu0  ;;  %v1643_v37 = vpop.f32.mrf.mxu1 }
 0x16e   : > { %v1010_v40 = vmax.f32 %v978_v33, 0.0  ;;  %v1026_v25 = vmax.f32 %v994_v34, 0.0  ;;  %v940_v41 = vmul.f32 %v1594_v35, %v2294_v42  ;;  %v956_v43 = vmul.f32 %v1642_v36, %v2294_v42 }
 0x16f   : > { %v1596_v44 = vpop.f32.mrf.mxu0  ;;  %v1644_v45 = vpop.f32.mrf.mxu1 }
 0x170   : > { %v1472_v46 = vpack.c.bf16 %v1010_v40, %v1009_v38  ;;  %v1512_v47 = vpack.c.bf16 %v1026_v25, %v1025_v39  ;;  %v1597_v27 = vadd.f32 %v1596_v44, %v1595_v28  ;;  %v1645_v48 = vadd.f32 %v1644_v45, %v1643_v37 }
 0x171   : > { %v979_v50 = vadd.f32 %v2301_v49, %v940_v41  ;;  %v995_v51 = vadd.f32 %v2301_v49, %v956_v43 }
 0x172   : > { %1524 = vst [vmem:[%s2312_s16 + $0x30] sm:$0xff] %v1472_v46   ;;  %1532 = vst [vmem:[%s2312_s16 + $0x70] sm:$0xff] %v1512_v47   ;;  %v941_v52 = vmul.f32 %v1597_v27, %v2294_v42  ;;  %v957_v53 = vmul.f32 %v1645_v48, %v2294_v42 }
 0x173   : > { %v1011_v56 = vmax.f32 %v979_v50, 0.0  ;;  %v1027_v57 = vmax.f32 %v995_v51, 0.0 }
 0x174   : > { %v980_v54 = vadd.f32 %v2301_v49, %v941_v52  ;;  %v996_v55 = vadd.f32 %v2301_v49, %v957_v53 }
 0x176   : > { %v1012_v58 = vmax.f32 %v980_v54, 0.0  ;;  %v1028_v59 = vmax.f32 %v996_v55, 0.0 }
 0x178   : > { %v1477_v42 = vpack.c.bf16 %v1012_v58, %v1011_v56  ;;  %v1517_v60 = vpack.c.bf16 %v1028_v59, %v1027_v57 }
 0x17a   : > { %1525 = vst [vmem:[%s2312_s16 + $0x38] sm:$0xff] %v1477_v42   ;;  %1533 = vst [vmem:[%s2312_s16 + $0x78] sm:$0xff] %v1517_v60  }
 0x17b   : > { %1860 = shalt.err (!%p1857_p2)
}
 0x17c   : > { %s1861_s21 = scalar_lea.hbm %s2387_s26, 2048  ;;  %s1865_s8 = scalar_lea.hbm %s2445_s6, 4096 }
 0x17d   : > { %p1862_p6 = scmp.ne.s32.totalorder %s2387_s26, %s1861_s21  ;;  %p1866_p0 = scmp.lt.s32.totalorder %s2387_s26, %s2445_s6 }
 0x17e   : > { %p1867_p10 = scmp.lt.s32.totalorder %s1865_s8, %s1861_s21 }
 0x17f   : > { %p1863_p11 = pnand %p1862_p6, %p2475_p7 }
 0x180   : > { %p1868_p5 = por %p1867_p10, %p1866_p0 }
 0x181   : > { %p1864_p1 = pneg %p1863_p11 }
 0x183   : > { %p1869_p3 = pnand %p1868_p5, %p1864_p1 }
 0x185   : > { %1872 = shalt.err (!%p1869_p3)
}
 0x186   : > { %s1941_s14 = smov 64   ;;  %s1942_s16 = smov 4  }
 0x187   : > { %1672 = dma.vmem_to_hbm [thread:$0]  (%p2475_p7), %s2389_s12, 2048, %s2387_s26, %s1190_s24, %s1941_s14, %s1941_s14, %s1942_s16  }
 0x188 PF: > { %s2476_s7 = sld [smem:[#allocation12_spill]] }
 0x189   : > { %s2477_s13 = sld [smem:[#allocation14_spill]] }
 0x18a   : > { %s2478_s1 = sld [smem:[#allocation13_spill]] }
 0x18e   : > { %s1219_s15 = sand.u32 1, %s2476_s7  }
 0x18f   : > { %p2479_p8 = scmp.ne.s32.totalorder %s2477_s13, 0  ;;  %s1220_s27 = scalar_lea.sflag [#allocation4], %s1219_s15 }
 0x190   : > { %p2480_p9 = scmp.ge.s32.totalorder %s2478_s1, 2 }
 0x192   : > { %p1686_p12 = pnand %p2480_p9, %p2479_p8 }
 0x194   : > { %p1687_p13 = pneg %p1686_p12 }
 0x196   : > { %1906 = dma.done.wait (%p1687_p13), %s1220_s27, 2048  }
 0x197   : > { %1908 = vsyncadd (%p1687_p13), %s1220_s27, 4294965248  ;;  %s23_s26 = sadd.s32 1, %s2478_s1   ;;  %s2481_s21 = smov %s1915_s22 }
 0x198   : > { %p20_p4 = scmp.ge.s32.totalorder %s23_s26, 4   ;;  %s2482_s22 = smov %s1919_s23 }
 0x199   : > { %s2483_s23 = smov %s2101_s19  ;;  %s2484_s24 = smov %s1927_s25 }
 0x19a   : > { %s2485_s25 = smov %s2487_s18  ;;  %22 = sbr.rel (!%p20_p4) target bundleno = 9 (0x9), region = 104 }
 0x19f   :  { %1225 = vsyncpa [#allocation3], 1 }
 0x1a0   :  { %1227 = vsyncpa [#allocation3 + $0x1], 1 }
 0x1a1   :  { %1228 = vsyncpa [#allocation6], 1 }
 0x1a2   :  { %1229 = vsyncpa [#allocation4], 1 }
 0x1a3   :  { %1231 = vsyncpa [#allocation4 + $0x1], 1 }

</bundles_post_ra>
